<compile_context>
chip_gen: v6e
topology: v6e:2x2x1
jax: 0.10.0
libtpu: 0.0.40
codegen_flags: <defaults>
</compile_context>

<pallas_src>
import functools

import jax
import jax.numpy as jnp
import numpy as np
from jax import lax
from jax.experimental import pallas as pl
from jax.experimental.pallas import tpu as pltpu


def sfgcn_kernel(dims, off, x_ref, fadj_ref, p_ref, out_ref):
    B, N, F, K, O, Kp, Ha, Hc = dims
    f32, bf16 = jnp.float32, jnp.bfloat16
    eps_bn = 1e-5
    BN = B * N
    TB = 2 * B
    TBN = TB * N

    def P(name, h, w):                       # static slice of the packed param slab
        r = off[name]
        return p_ref[r:r + h, 0:w]

    def vrow(i, w):                          # one row of the packed vector block
        r = off['vecs'] + i
        return p_ref[r:r + 1, 0:w]

    def bdot(a, b):                          # bf16-input MXU matmul, f32 accumulate
        return jnp.dot(a.astype(bf16), b.astype(bf16), preferred_element_type=f32)

    def fdot(a, b):                          # f32 matmul (exact structure matrices)
        return jnp.dot(a, b, preferred_element_type=f32)

    # ---- BN1 = BatchNorm1d(F) on x.transpose(1,2) (training-mode statistics) ----
    x = x_ref[...]                                               # (B, N, F)
    mean1 = jnp.mean(x, axis=(0, 1), keepdims=True)
    var1 = jnp.mean((x - mean1) ** 2, axis=(0, 1), keepdims=True)
    xn = (x - mean1) * lax.rsqrt(var1 + eps_bn) * vrow(0, F) + vrow(1, F)

    # ---- Attentionadj over PLV bands: lane-axis softmax over Kp ----
    fflat = fadj_ref[...].reshape(BN, Kp * N)                    # band-major lanes
    h1 = jnp.tanh(bdot(fflat, P('adjW1', Kp * N, Kp * Ha)) + vrow(2, Kp * Ha))
    lg1 = bdot(h1, P('adjW2', Kp * Ha, Kp))                      # (BN, Kp)
    lg1 = lg1 - jnp.max(lg1, axis=-1, keepdims=True)
    e1 = jnp.exp(lg1)
    beta_plv = e1 * pl.reciprocal(jnp.sum(e1, axis=-1, keepdims=True), approx=True)

    # weighted band sum via expand/fold structure matmuls (no lane-offset slices)
    bexp = fdot(beta_plv, P('Eplv', Kp, Kp * N))                 # (BN, Kp*N)
    fA = fdot(bexp * fflat, P('Splv', Kp * N, N)).reshape(B, N, N)

    # ---- normalize_A via elementwise D * A * D ----
    fA = jnp.maximum(fA, 0.0)
    df = lax.rsqrt(jnp.sum(fA, axis=1) + 1e-10)                  # (B, N)
    fL = fA * df[:, :, None] * df[:, None, :]

    sA = jnp.maximum(P('aeye', N, N), 0.0)                       # A + I (wrapper)
    ds = lax.rsqrt(jnp.sum(sA, axis=1) + 1e-10)                  # (N,)
    sL = sA * ds[:, None] * ds[None, :]

    # ---- block-diagonal Laplacian: [sL]*B then fL[b] on the diagonal, so every
    #      Chebyshev step is ONE 2-D MXU push instead of 2B batched pushes ----
    L_rows = jnp.concatenate([sL] * B + [fL.reshape(BN, N)], axis=0)      # (TBN, N)
    L_blk = fdot(L_rows, P('selN', N, TBN)) * P('blkmask', TBN, TBN)      # (TBN, TBN)
    Lb = L_blk.astype(bf16)

    # ---- Chebyshev recursion + fused GCN weights: one (F, 4O) slice per order k
    #      covers SGCN1/CGCN (sadj rows) and SGCN2/CGCN (fadj rows) ----
    cur = jnp.concatenate([xn, xn], axis=0).reshape(TBN, F)      # (TBN, F)
    Wc = P('wc', K * F, 4 * O).astype(bf16)
    res = bdot(cur, Wc[0:F])
    for k in range(1, K):
        cur = jnp.dot(Lb, cur.astype(bf16), preferred_element_type=f32)
        res = res + bdot(cur, Wc[k * F:(k + 1) * F])
    res = jnp.maximum(res, 0.0).reshape(TB, N, 4 * O)

    emb1 = res[:B, :, 0 * O:1 * O]            # SGCN1(x, sadj)
    com1 = res[:B, :, 1 * O:2 * O]            # CGCN (x, sadj)
    emb2 = res[B:, :, 2 * O:3 * O]            # SGCN2(x, fadj)
    com2 = res[B:, :, 3 * O:4 * O]            # CGCN (x, fadj)
    xcom = (com1 + com2) * 0.5

    # ---- Attention over {emb1, emb2, Xcom}: lane-axis softmax over 3 ----
    ecat = jnp.concatenate([emb1, emb2, xcom], axis=-1).reshape(BN, 3 * O)
    h2 = jnp.tanh(bdot(ecat, P('attW1', 3 * O, 3 * Hc)) + vrow(3, 3 * Hc))
    lg2 = bdot(h2, P('attW2', 3 * Hc, 3))                        # (BN, 3)
    lg2 = lg2 - jnp.max(lg2, axis=-1, keepdims=True)
    e2 = jnp.exp(lg2)
    beta = e2 / jnp.sum(e2, axis=-1, keepdims=True)   # exact: beta is returned
    bexp2 = fdot(beta, P('Eatt', 3, 3 * O))                      # (BN, 3O)
    out_att = fdot(bexp2 * ecat, P('Satt', 3 * O, O))            # (BN, O)

    # ---- bn = BatchNorm1d(N) (training-mode statistics) + ReLU ----
    oa3 = out_att.reshape(B, N, O)
    mean2 = jnp.mean(oa3, axis=(0, 2), keepdims=True)
    var2 = jnp.mean((oa3 - mean2) ** 2, axis=(0, 2), keepdims=True)
    bn2 = P('bn2', N, 2)
    y = (oa3 - mean2) * lax.rsqrt(var2 + eps_bn) * bn2[:, 0:1].reshape(1, N, 1) \
        + bn2[:, 1:2].reshape(1, N, 1)
    y = jnp.maximum(y, 0.0)

    # ---- AvgPool2d as two 2-D matmuls with zero-padded pooling matrices ----
    pooled = fdot(P('plblk', BN, BN),
                  fdot(y.reshape(BN, O), P('pr', O, O))).reshape(B, N, O)

    # ---- single lane-dense output slab (width padded to a multiple of 128) ----
    if O > 3:
        beta_pad = jnp.concatenate(
            [beta.reshape(B, N, 3), jnp.zeros((B, N, O - 3), f32)], axis=-1)
    else:
        beta_pad = beta.reshape(B, N, 3)[:, :, :O]
    chunks = [emb1, emb2, com1, com2, xcom, oa3, pooled, beta_pad]
    wout = out_ref.shape[-1]
    if wout > 8 * O:
        chunks.append(jnp.zeros((B, N, wout - 8 * O), f32))
    out_ref[...] = jnp.concatenate(chunks, axis=-1)


def _pack_param_slab(blocks):
    """Stack 2-D blocks into one (rows, 128) f32 slab; 8-aligned rows, lane 0."""
    off, rows, r = {}, [], 0
    for name, m in blocks:
        m = jnp.asarray(m, jnp.float32)
        if m.ndim == 1:
            m = m[None, :]
        h, w = m.shape
        assert w <= 128, f"param block {name} wider than 128 lanes"
        hp = -(-h // 8) * 8
        rows.append(jnp.zeros((hp, 128), jnp.float32).at[:h, :w].set(m))
        off[name] = r
        r += hp
    return jnp.concatenate(rows, axis=0), off


def sfgcn_forward(x, fadj, params, K, pool):
    B, N, F = x.shape
    Kp = fadj.shape[-1]
    gcnW = params['gcnW']                        # (3, K, F, O)
    O = gcnW.shape[-1]
    Ha = params['adjW1'].shape[1]
    Hc = params['attW1'].shape[1]
    TBN = 2 * B * N
    Np2, Op2 = N // pool, O // pool
    f32 = jnp.float32

    # packing/layout assumptions (see review correctness notes)
    assert O >= 3, "output slab packs the 3-wide beta into an O-wide chunk"
    assert N % pool == 0 and O % pool == 0
    assert max(Kp * N, Kp * Ha, 4 * O, 3 * O, 3 * Hc, TBN) <= 128

    # glue: fadj.permute(0,3,1,2), PLV bands flattened onto the lane axis
    fadj_flat = jnp.transpose(fadj, (0, 1, 3, 2)).reshape(B, N, Kp * N)

    eyeKp = jnp.eye(Kp, dtype=f32)
    eye3 = jnp.eye(3, dtype=f32)
    adjW1_blk = jnp.kron(eyeKp, params['adjW1'].astype(f32))     # (Kp*N, Kp*Ha)
    adjW2_blk = jnp.kron(eyeKp, params['adjW2'].astype(f32))     # (Kp*Ha, Kp)
    attW1_blk = jnp.kron(eye3, params['attW1'].astype(f32))      # (3O, 3Hc)
    attW2_blk = jnp.kron(eye3, params['attW2'].astype(f32))      # (3Hc, 3)

    # fused GCN weight: per order k a (F, 4O) slice [SGCN1 | CGCN | SGCN2 | CGCN];
    # sadj rows read lanes [0, 2O), fadj rows read lanes [2O, 4O).
    Wc = jnp.concatenate([gcnW[0], gcnW[2], gcnW[1], gcnW[2]],
                         axis=-1).reshape(K * F, 4 * O)

    a_eye = params['A'].astype(f32) + jnp.eye(N, dtype=f32)

    # 0/1 structure matrices: expand/fold for the two per-row mixtures, the
    # block-diagonal Laplacian builder, and zero-padded average pooling.
    nn_ = jnp.arange(N); kk = jnp.arange(Kp); cc = jnp.arange(Kp * N)
    Eplv = (cc[None, :] // N == kk[:, None]).astype(f32)         # (Kp, Kp*N)
    Splv = (cc[:, None] % N == nn_[None, :]).astype(f32)         # (Kp*N, N)
    mm = jnp.arange(3); c3 = jnp.arange(3 * O); oo = jnp.arange(O)
    Eatt = (c3[None, :] // O == mm[:, None]).astype(f32)         # (3, 3O)
    Satt = (c3[:, None] % O == oo[None, :]).astype(f32)          # (3O, O)
    rr = jnp.arange(TBN)
    selN = (rr[None, :] % N == nn_[:, None]).astype(f32)         # (N, TBN)
    blkmask = (rr[:, None] // N == rr[None, :] // N).astype(f32)  # (TBN, TBN)

    PL = jnp.where((nn_[:, None] < Np2) & (nn_[None, :] // pool == nn_[:, None]),
                   1.0 / pool, 0.0).astype(f32)                  # (N, N)
    PLblk = jnp.kron(jnp.eye(B, dtype=f32), PL)                  # (B*N, B*N)
    PR = jnp.where((oo[None, :] < Op2) & (oo[:, None] // pool == oo[None, :]),
                   1.0 / pool, 0.0).astype(f32)                  # (O, O)

    bn2 = jnp.stack([params['bn2_g'], params['bn2_b']], axis=1).astype(f32)  # (N, 2)
    vecs = jnp.zeros((4, 128), f32)
    vecs = vecs.at[0, :F].set(params['bn1_g'])
    vecs = vecs.at[1, :F].set(params['bn1_b'])
    vecs = vecs.at[2, :Kp * Ha].set(jnp.tile(params['adjb1'], Kp))
    vecs = vecs.at[3, :3 * Hc].set(jnp.tile(params['attb1'], 3))

    pslab, off = _pack_param_slab([
        ('wc', Wc), ('adjW1', adjW1_blk), ('adjW2', adjW2_blk),
        ('attW1', attW1_blk), ('attW2', attW2_blk), ('aeye', a_eye),
        ('selN', selN), ('blkmask', blkmask),
        ('Eplv', Eplv), ('Splv', Splv), ('Eatt', Eatt), ('Satt', Satt),
        ('plblk', PLblk), ('pr', PR), ('bn2', bn2), ('vecs', vecs)])

    wout = -(-8 * O // 128) * 128        # keep the final store a full-width vst
    dims = (B, N, F, K, O, Kp, Ha, Hc)
    vmem = pl.BlockSpec(memory_space=pltpu.MemorySpace.VMEM)
    slab = pl.pallas_call(
        functools.partial(sfgcn_kernel, dims, off),
        out_shape=jax.ShapeDtypeStruct((B, N, wout), f32),
        in_specs=[vmem, vmem, vmem],
        out_specs=vmem,
    )(x, fadj_flat, pslab)

    emb1 = slab[:, :, 0 * O:1 * O]
    emb2 = slab[:, :, 1 * O:2 * O]
    com1 = slab[:, :, 2 * O:3 * O]
    com2 = slab[:, :, 3 * O:4 * O]
    xcom = slab[:, :, 4 * O:5 * O]
    out_att = slab[:, :, 5 * O:6 * O]
    pooled = slab[:, :Np2, 6 * O:6 * O + Op2]
    beta = slab[:, :, 7 * O:7 * O + 3]

    output = pooled.reshape(B, -1)                      # glue: output.reshape(B, -1)
    att = jnp.transpose(beta, (0, 2, 1))[..., None]     # (B, 3, N, 1)
    emb = jnp.stack([emb1, emb2, xcom], axis=1)         # (B, 3, N, O)
    return output, att, emb1, com1, com2, emb2, emb, xcom, out_att


def reference_forward(x, fadj_in, P, K, pool):
    """Pure-JAX mirror of the PyTorch forward (training-mode BN)."""
    eps = 1e-5
    B, N, F = x.shape
    mean = x.mean(axis=(0, 1), keepdims=True)
    var = ((x - mean) ** 2).mean(axis=(0, 1), keepdims=True)
    xn = (x - mean) / jnp.sqrt(var + eps) * P['bn1_g'] + P['bn1_b']

    fadj = jnp.transpose(fadj_in, (0, 3, 1, 2))
    w = jnp.tanh(fadj @ P['adjW1'] + P['adjb1']) @ P['adjW2']
    beta = jax.nn.softmax(w, axis=1)
    fA = (beta * fadj).sum(axis=1)

    def normalize_A(A):
        A = jnp.maximum(A, 0.0)
        d = 1.0 / jnp.sqrt(jnp.sum(A, axis=1) + 1e-10)
        D = jnp.diag(d) if A.ndim == 2 else jax.vmap(jnp.diag)(d)
        return D @ A @ D

    fL = normalize_A(fA)
    sL = normalize_A(P['A'] + jnp.eye(N, dtype=jnp.float32))

    def cheby(L, Ws):
        sup = [jnp.eye(N, dtype=jnp.float32), L]
        for _ in range(2, K):
            sup.append(sup[-1] @ L)
        res = None
        for k in range(K):
            t = (sup[k] @ xn) @ Ws[k]
            res = t if res is None else res + t
        return jax.nn.relu(res)

    W = P['gcnW']
    emb1 = cheby(sL, W[0]); emb2 = cheby(fL, W[1])
    com1 = cheby(sL, W[2]); com2 = cheby(fL, W[2])
    Xcom = (com1 + com2) / 2
    emb = jnp.stack([emb1, emb2, Xcom], axis=1)
    w2 = jnp.tanh(emb @ P['attW1'] + P['attb1']) @ P['attW2']
    beta2 = jax.nn.softmax(w2, axis=1)
    out_att = (beta2 * emb).sum(axis=1)
    m2 = out_att.mean(axis=(0, 2), keepdims=True)
    v2 = ((out_att - m2) ** 2).mean(axis=(0, 2), keepdims=True)
    y = (out_att - m2) / jnp.sqrt(v2 + eps) * P['bn2_g'][None, :, None] + P['bn2_b'][None, :, None]
    y = jax.nn.relu(y)
    O = y.shape[-1]
    pooled = y.reshape(B, N // pool, pool, O // pool, pool).mean(axis=(2, 4))
    return (pooled.reshape(B, -1), beta2, emb1, com1, com2, emb2, emb, Xcom, out_att)


if __name__ == "__main__":
    # SFGCN(xdim=(N, F), kadj=K, num_out=O, att_hidden, att_plv_hidden, dropout, avgpool)
    B, N, F = 2, 8, 16
    K = 3
    O = 16
    H_att = 16
    H_adj = 8
    Kp = 4
    pool = 2

    key = jax.random.PRNGKey(0)
    ks = jax.random.split(key, 8)
    x = jax.random.normal(ks[0], (B, N, F), jnp.float32)
    fadj = jax.random.uniform(ks[1], (B, N, N, Kp), jnp.float32)

    def kaiming(k, shape):
        return jax.random.normal(k, shape, jnp.float32) * jnp.sqrt(2.0 / shape[0])

    params = dict(
        A=kaiming(ks[2], (N, N)),
        bn1_g=jnp.ones((F,), jnp.float32), bn1_b=jnp.zeros((F,), jnp.float32),
        adjW1=kaiming(ks[3], (N, H_adj)), adjb1=jnp.zeros((H_adj,), jnp.float32),
        adjW2=kaiming(ks[4], (H_adj, 1)),
        attW1=kaiming(ks[5], (O, H_att)), attb1=jnp.zeros((H_att,), jnp.float32),
        attW2=kaiming(ks[6], (H_att, 1)),
        gcnW=jax.random.normal(ks[7], (3, K, F, O), jnp.float32) * jnp.sqrt(2.0 / F),
        bn2_g=jnp.ones((N,), jnp.float32), bn2_b=jnp.zeros((N,), jnp.float32),
    )

    outs = jax.block_until_ready(sfgcn_forward(x, fadj, params, K, pool))

    with jax.default_matmul_precision("highest"):
        refs = jax.block_until_ready(reference_forward(x, fadj, params, K, pool))

    # Tolerance reflects bfloat16 MXU inputs (f32 accumulation) used per the
    # v5e/v6e performance guidance; observed error is well below this bound.
    for got, want in zip(outs, refs):
        np.testing.assert_allclose(np.asarray(got), np.asarray(want),
                                   rtol=5e-2, atol=5e-2)

    print("KERNEL_OK")
</pallas_src>

<mosaic_0001>
module attributes {stable_mosaic.version = 11 : i64} {
  func.func @sfgcn_kernel(%arg0: memref<2x8x16xf32, #tpu.memory_space<vmem>>, %arg1: memref<2x8x32xf32, #tpu.memory_space<vmem>>, %arg2: memref<400x128xf32, #tpu.memory_space<vmem>>, %arg3: memref<2x8x128xf32, #tpu.memory_space<vmem>>) attributes {dimension_semantics = [], scalar_prefetch = 0 : i64, scratch_operands = 0 : i64, tpu.core_type = #tpu.core_type<tc>} {
    %c0 = arith.constant 0 : index
    %c0_0 = arith.constant 0 : index
    %c0_1 = arith.constant 0 : index
    %0 = vector.load %arg0[%c0, %c0_0, %c0_1] : memref<2x8x16xf32, #tpu.memory_space<vmem>>, vector<2x8x16xf32>
    %cst = arith.constant dense<0.000000e+00> : vector<16xf32>
    %1 = vector.multi_reduction <add>, %0, %cst [0, 1] : vector<2x8x16xf32> to vector<16xf32>
    %2 = vector.shape_cast %1 : vector<16xf32> to vector<1x1x16xf32>
    %cst_2 = arith.constant 1.600000e+01 : f32
    %3 = vector.broadcast %cst_2 : f32 to vector<1x1x16xf32>
    %4 = arith.divf %2, %3 : vector<1x1x16xf32>
    %5 = vector.broadcast %4 : vector<1x1x16xf32> to vector<2x8x16xf32>
    %6 = arith.subf %0, %5 : vector<2x8x16xf32>
    %7 = arith.mulf %6, %6 : vector<2x8x16xf32>
    %cst_3 = arith.constant dense<0.000000e+00> : vector<16xf32>
    %8 = vector.multi_reduction <add>, %7, %cst_3 [0, 1] : vector<2x8x16xf32> to vector<16xf32>
    %9 = vector.shape_cast %8 : vector<16xf32> to vector<1x1x16xf32>
    %cst_4 = arith.constant 1.600000e+01 : f32
    %10 = vector.broadcast %cst_4 : f32 to vector<1x1x16xf32>
    %11 = arith.divf %9, %10 : vector<1x1x16xf32>
    %12 = vector.broadcast %4 : vector<1x1x16xf32> to vector<2x8x16xf32>
    %13 = arith.subf %0, %12 : vector<2x8x16xf32>
    %cst_5 = arith.constant 9.99999974E-6 : f32
    %14 = vector.broadcast %cst_5 : f32 to vector<1x1x16xf32>
    %15 = arith.addf %11, %14 : vector<1x1x16xf32>
    %16 = math.rsqrt %15 : vector<1x1x16xf32>
    %17 = vector.broadcast %16 : vector<1x1x16xf32> to vector<2x8x16xf32>
    %18 = arith.mulf %13, %17 : vector<2x8x16xf32>
    %c392 = arith.constant 392 : index
    %c0_6 = arith.constant 0 : index
    %19 = vector.load %arg2[%c392, %c0_6] : memref<400x128xf32, #tpu.memory_space<vmem>>, vector<1x16xf32>
    %20 = vector.shape_cast %19 : vector<1x16xf32> to vector<1x1x16xf32>
    %21 = vector.broadcast %20 : vector<1x1x16xf32> to vector<2x8x16xf32>
    %22 = arith.mulf %18, %21 : vector<2x8x16xf32>
    %c393 = arith.constant 393 : index
    %c0_7 = arith.constant 0 : index
    %23 = vector.load %arg2[%c393, %c0_7] : memref<400x128xf32, #tpu.memory_space<vmem>>, vector<1x16xf32>
    %24 = vector.shape_cast %23 : vector<1x16xf32> to vector<1x1x16xf32>
    %25 = vector.broadcast %24 : vector<1x1x16xf32> to vector<2x8x16xf32>
    %26 = arith.addf %22, %25 : vector<2x8x16xf32>
    %c0_8 = arith.constant 0 : index
    %c0_9 = arith.constant 0 : index
    %c0_10 = arith.constant 0 : index
    %27 = vector.load %arg1[%c0_8, %c0_9, %c0_10] : memref<2x8x32xf32, #tpu.memory_space<vmem>>, vector<2x8x32xf32>
    %28 = vector.shape_cast %27 : vector<2x8x32xf32> to vector<16x32xf32>
    %c48 = arith.constant 48 : index
    %c0_11 = arith.constant 0 : index
    %29 = vector.load %arg2[%c48, %c0_11] : memref<400x128xf32, #tpu.memory_space<vmem>>, vector<32x32xf32>
    %30 = arith.truncf %28 : vector<16x32xf32> to vector<16x32xbf16>
    %31 = arith.truncf %29 : vector<32x32xf32> to vector<32x32xbf16>
    %cst_12 = arith.constant dense<0.000000e+00> : vector<16x32xf32>
    %32 = tpu.matmul %30, %31, %cst_12 {dimension_numbers = #tpu.dot_dimension_numbers<[1], [0], [0], [1], [0, 0, 1, 1], [], []>} : vector<16x32xbf16>, vector<32x32xbf16>, vector<16x32xf32> -> vector<16x32xf32>
    %c394 = arith.constant 394 : index
    %c0_13 = arith.constant 0 : index
    %33 = vector.load %arg2[%c394, %c0_13] : memref<400x128xf32, #tpu.memory_space<vmem>>, vector<1x32xf32>
    %34 = vector.broadcast %33 : vector<1x32xf32> to vector<16x32xf32>
    %35 = arith.addf %32, %34 : vector<16x32xf32>
    %36 = math.tanh %35 : vector<16x32xf32>
    %c80 = arith.constant 80 : index
    %c0_14 = arith.constant 0 : index
    %37 = vector.load %arg2[%c80, %c0_14] : memref<400x128xf32, #tpu.memory_space<vmem>>, vector<32x4xf32>
    %38 = arith.truncf %36 : vector<16x32xf32> to vector<16x32xbf16>
    %39 = arith.truncf %37 : vector<32x4xf32> to vector<32x4xbf16>
    %cst_15 = arith.constant dense<0.000000e+00> : vector<16x4xf32>
    %40 = tpu.matmul %38, %39, %cst_15 {dimension_numbers = #tpu.dot_dimension_numbers<[1], [0], [0], [1], [0, 0, 1, 1], [], []>} : vector<16x32xbf16>, vector<32x4xbf16>, vector<16x4xf32> -> vector<16x4xf32>
    %cst_16 = arith.constant dense<0xFF800000> : vector<16xf32>
    %41 = vector.multi_reduction <maximumf>, %40, %cst_16 [1] : vector<16x4xf32> to vector<16xf32>
    %42 = vector.shape_cast %41 : vector<16xf32> to vector<16x1xf32>
    %43 = vector.broadcast %42 : vector<16x1xf32> to vector<16x4xf32>
    %44 = arith.subf %40, %43 : vector<16x4xf32>
    %45 = math.exp %44 : vector<16x4xf32>
    %cst_17 = arith.constant dense<0.000000e+00> : vector<16xf32>
    %46 = vector.multi_reduction <add>, %45, %cst_17 [1] : vector<16x4xf32> to vector<16xf32>
    %47 = vector.shape_cast %46 : vector<16xf32> to vector<16x1xf32>
    %48 = tpu.reciprocal %47 {approx = true} : vector<16x1xf32> -> vector<16x1xf32>
    %49 = vector.broadcast %48 : vector<16x1xf32> to vector<16x4xf32>
    %50 = arith.mulf %45, %49 : vector<16x4xf32>
    %c256 = arith.constant 256 : index
    %c0_18 = arith.constant 0 : index
    %51 = vector.load %arg2[%c256, %c0_18] : memref<400x128xf32, #tpu.memory_space<vmem>>, vector<4x32xf32>
    %cst_19 = arith.constant dense<0.000000e+00> : vector<16x32xf32>
    %52 = tpu.matmul %50, %51, %cst_19 {dimension_numbers = #tpu.dot_dimension_numbers<[1], [0], [0], [1], [0, 0, 1, 1], [], []>} : vector<16x4xf32>, vector<4x32xf32>, vector<16x32xf32> -> vector<16x32xf32>
    %53 = arith.mulf %52, %28 : vector<16x32xf32>
    %c264 = arith.constant 264 : index
    %c0_20 = arith.constant 0 : index
    %54 = vector.load %arg2[%c264, %c0_20] : memref<400x128xf32, #tpu.memory_space<vmem>>, vector<32x8xf32>
    %cst_21 = arith.constant dense<0.000000e+00> : vector<16x8xf32>
    %55 = tpu.matmul %53, %54, %cst_21 {dimension_numbers = #tpu.dot_dimension_numbers<[1], [0], [0], [1], [0, 0, 1, 1], [], []>} : vector<16x32xf32>, vector<32x8xf32>, vector<16x8xf32> -> vector<16x8xf32>
    %56 = vector.shape_cast %55 : vector<16x8xf32> to vector<2x8x8xf32>
    %cst_22 = arith.constant 0.000000e+00 : f32
    %57 = vector.broadcast %cst_22 : f32 to vector<2x8x8xf32>
    %58 = arith.maximumf %56, %57 : vector<2x8x8xf32>
    %cst_23 = arith.constant dense<0.000000e+00> : vector<2x8xf32>
    %59 = vector.multi_reduction <add>, %58, %cst_23 [1] : vector<2x8x8xf32> to vector<2x8xf32>
    %cst_24 = arith.constant 1.000000e-10 : f32
    %60 = vector.broadcast %cst_24 : f32 to vector<2x8xf32>
    %61 = arith.addf %59, %60 : vector<2x8xf32>
    %62 = math.rsqrt %61 : vector<2x8xf32>
    %63 = vector.shape_cast %62 : vector<2x8xf32> to vector<2x8x1xf32>
    %64 = vector.broadcast %63 : vector<2x8x1xf32> to vector<2x8x8xf32>
    %65 = arith.mulf %58, %64 : vector<2x8x8xf32>
    %66 = vector.shape_cast %62 : vector<2x8xf32> to vector<2x1x8xf32>
    %67 = vector.broadcast %66 : vector<2x1x8xf32> to vector<2x8x8xf32>
    %68 = arith.mulf %65, %67 : vector<2x8x8xf32>
    %c208 = arith.constant 208 : index
    %c0_25 = arith.constant 0 : index
    %69 = vector.load %arg2[%c208, %c0_25] : memref<400x128xf32, #tpu.memory_space<vmem>>, vector<8x8xf32>
    %cst_26 = arith.constant 0.000000e+00 : f32
    %70 = vector.broadcast %cst_26 : f32 to vector<8x8xf32>
    %71 = arith.maximumf %69, %70 : vector<8x8xf32>
    %cst_27 = arith.constant dense<0.000000e+00> : vector<8xf32>
    %72 = vector.multi_reduction <add>, %71, %cst_27 [1] : vector<8x8xf32> to vector<8xf32>
    %cst_28 = arith.constant 1.000000e-10 : f32
    %73 = vector.broadcast %cst_28 : f32 to vector<8xf32>
    %74 = arith.addf %72, %73 : vector<8xf32>
    %75 = math.rsqrt %74 : vector<8xf32>
    %76 = vector.shape_cast %75 : vector<8xf32> to vector<8x1xf32>
    %77 = vector.broadcast %76 : vector<8x1xf32> to vector<8x8xf32>
    %78 = arith.mulf %71, %77 : vector<8x8xf32>
    %79 = vector.shape_cast %75 : vector<8xf32> to vector<1x8xf32>
    %80 = vector.broadcast %79 : vector<1x8xf32> to vector<8x8xf32>
    %81 = arith.mulf %78, %80 : vector<8x8xf32>
    %82 = vector.shape_cast %68 : vector<2x8x8xf32> to vector<16x8xf32>
    %83 = tpu.concatenate %81, %81, %82 in 0 : vector<8x8xf32>, vector<8x8xf32>, vector<16x8xf32> -> vector<32x8xf32>
    %c216 = arith.constant 216 : index
    %c0_29 = arith.constant 0 : index
    %84 = vector.load %arg2[%c216, %c0_29] : memref<400x128xf32, #tpu.memory_space<vmem>>, vector<8x32xf32>
    %cst_30 = arith.constant dense<0.000000e+00> : vector<32x32xf32>
    %85 = tpu.matmul %83, %84, %cst_30 {dimension_numbers = #tpu.dot_dimension_numbers<[1], [0], [0], [1], [0, 0, 1, 1], [], []>} : vector<32x8xf32>, vector<8x32xf32>, vector<32x32xf32> -> vector<32x32xf32>
    %c224 = arith.constant 224 : index
    %c0_31 = arith.constant 0 : index
    %86 = vector.load %arg2[%c224, %c0_31] : memref<400x128xf32, #tpu.memory_space<vmem>>, vector<32x32xf32>
    %87 = arith.mulf %85, %86 : vector<32x32xf32>
    %88 = arith.truncf %87 : vector<32x32xf32> to vector<32x32xbf16>
    %89 = tpu.concatenate %26, %26 in 0 : vector<2x8x16xf32>, vector<2x8x16xf32> -> vector<4x8x16xf32>
    %90 = vector.shape_cast %89 : vector<4x8x16xf32> to vector<32x16xf32>
    %c0_32 = arith.constant 0 : index
    %c0_33 = arith.constant 0 : index
    %91 = vector.load %arg2[%c0_32, %c0_33] : memref<400x128xf32, #tpu.memory_space<vmem>>, vector<48x64xf32>
    %92 = arith.truncf %91 : vector<48x64xf32> to vector<48x64xbf16>
    %93 = vector.extract_strided_slice %92 {offsets = [0, 0], sizes = [16, 64], strides = [1, 1]} : vector<48x64xbf16> to vector<16x64xbf16>
    %94 = arith.truncf %90 : vector<32x16xf32> to vector<32x16xbf16>
    %cst_34 = arith.constant dense<0.000000e+00> : vector<32x64xf32>
    %95 = tpu.matmul %94, %93, %cst_34 {dimension_numbers = #tpu.dot_dimension_numbers<[1], [0], [0], [1], [0, 0, 1, 1], [], []>} : vector<32x16xbf16>, vector<16x64xbf16>, vector<32x64xf32> -> vector<32x64xf32>
    %96 = arith.truncf %90 : vector<32x16xf32> to vector<32x16xbf16>
    %cst_35 = arith.constant dense<0.000000e+00> : vector<32x16xf32>
    %97 = tpu.matmul %88, %96, %cst_35 {dimension_numbers = #tpu.dot_dimension_numbers<[1], [0], [0], [1], [0, 0, 1, 1], [], []>} : vector<32x32xbf16>, vector<32x16xbf16>, vector<32x16xf32> -> vector<32x16xf32>
    %98 = vector.extract_strided_slice %92 {offsets = [16, 0], sizes = [16, 64], strides = [1, 1]} : vector<48x64xbf16> to vector<16x64xbf16>
    %99 = arith.truncf %97 : vector<32x16xf32> to vector<32x16xbf16>
    %cst_36 = arith.constant dense<0.000000e+00> : vector<32x64xf32>
    %100 = tpu.matmul %99, %98, %cst_36 {dimension_numbers = #tpu.dot_dimension_numbers<[1], [0], [0], [1], [0, 0, 1, 1], [], []>} : vector<32x16xbf16>, vector<16x64xbf16>, vector<32x64xf32> -> vector<32x64xf32>
    %101 = arith.addf %95, %100 : vector<32x64xf32>
    %102 = arith.truncf %97 : vector<32x16xf32> to vector<32x16xbf16>
    %cst_37 = arith.constant dense<0.000000e+00> : vector<32x16xf32>
    %103 = tpu.matmul %88, %102, %cst_37 {dimension_numbers = #tpu.dot_dimension_numbers<[1], [0], [0], [1], [0, 0, 1, 1], [], []>} : vector<32x32xbf16>, vector<32x16xbf16>, vector<32x16xf32> -> vector<32x16xf32>
    %104 = vector.extract_strided_slice %92 {offsets = [32, 0], sizes = [16, 64], strides = [1, 1]} : vector<48x64xbf16> to vector<16x64xbf16>
    %105 = arith.truncf %103 : vector<32x16xf32> to vector<32x16xbf16>
    %cst_38 = arith.constant dense<0.000000e+00> : vector<32x64xf32>
    %106 = tpu.matmul %105, %104, %cst_38 {dimension_numbers = #tpu.dot_dimension_numbers<[1], [0], [0], [1], [0, 0, 1, 1], [], []>} : vector<32x16xbf16>, vector<16x64xbf16>, vector<32x64xf32> -> vector<32x64xf32>
    %107 = arith.addf %101, %106 : vector<32x64xf32>
    %cst_39 = arith.constant 0.000000e+00 : f32
    %108 = vector.broadcast %cst_39 : f32 to vector<32x64xf32>
    %109 = arith.maximumf %107, %108 : vector<32x64xf32>
    %110 = vector.shape_cast %109 : vector<32x64xf32> to vector<4x8x64xf32>
    %111 = vector.extract_strided_slice %110 {offsets = [0, 0, 0], sizes = [2, 8, 16], strides = [1, 1, 1]} : vector<4x8x64xf32> to vector<2x8x16xf32>
    %112 = vector.extract_strided_slice %110 {offsets = [0, 0, 16], sizes = [2, 8, 16], strides = [1, 1, 1]} : vector<4x8x64xf32> to vector<2x8x16xf32>
    %113 = vector.extract_strided_slice %110 {offsets = [2, 0, 32], sizes = [2, 8, 16], strides = [1, 1, 1]} : vector<4x8x64xf32> to vector<2x8x16xf32>
    %114 = vector.extract_strided_slice %110 {offsets = [2, 0, 48], sizes = [2, 8, 16], strides = [1, 1, 1]} : vector<4x8x64xf32> to vector<2x8x16xf32>
    %115 = arith.addf %112, %114 : vector<2x8x16xf32>
    %cst_40 = arith.constant 5.000000e-01 : f32
    %116 = vector.broadcast %cst_40 : f32 to vector<2x8x16xf32>
    %117 = arith.mulf %115, %116 : vector<2x8x16xf32>
    %118 = tpu.concatenate %111, %113, %117 in 2 : vector<2x8x16xf32>, vector<2x8x16xf32>, vector<2x8x16xf32> -> vector<2x8x48xf32>
    %119 = vector.shape_cast %118 : vector<2x8x48xf32> to vector<16x48xf32>
    %c112 = arith.constant 112 : index
    %c0_41 = arith.constant 0 : index
    %120 = vector.load %arg2[%c112, %c0_41] : memref<400x128xf32, #tpu.memory_space<vmem>>, vector<48x48xf32>
    %121 = arith.truncf %119 : vector<16x48xf32> to vector<16x48xbf16>
    %122 = arith.truncf %120 : vector<48x48xf32> to vector<48x48xbf16>
    %cst_42 = arith.constant dense<0.000000e+00> : vector<16x48xf32>
    %123 = tpu.matmul %121, %122, %cst_42 {dimension_numbers = #tpu.dot_dimension_numbers<[1], [0], [0], [1], [0, 0, 1, 1], [], []>} : vector<16x48xbf16>, vector<48x48xbf16>, vector<16x48xf32> -> vector<16x48xf32>
    %c395 = arith.constant 395 : index
    %c0_43 = arith.constant 0 : index
    %124 = vector.load %arg2[%c395, %c0_43] : memref<400x128xf32, #tpu.memory_space<vmem>>, vector<1x48xf32>
    %125 = vector.broadcast %124 : vector<1x48xf32> to vector<16x48xf32>
    %126 = arith.addf %123, %125 : vector<16x48xf32>
    %127 = math.tanh %126 : vector<16x48xf32>
    %c160 = arith.constant 160 : index
    %c0_44 = arith.constant 0 : index
    %128 = vector.load %arg2[%c160, %c0_44] : memref<400x128xf32, #tpu.memory_space<vmem>>, vector<48x3xf32>
    %129 = arith.truncf %127 : vector<16x48xf32> to vector<16x48xbf16>
    %130 = arith.truncf %128 : vector<48x3xf32> to vector<48x3xbf16>
    %cst_45 = arith.constant dense<0.000000e+00> : vector<16x3xf32>
    %131 = tpu.matmul %129, %130, %cst_45 {dimension_numbers = #tpu.dot_dimension_numbers<[1], [0], [0], [1], [0, 0, 1, 1], [], []>} : vector<16x48xbf16>, vector<48x3xbf16>, vector<16x3xf32> -> vector<16x3xf32>
    %cst_46 = arith.constant dense<0xFF800000> : vector<16xf32>
    %132 = vector.multi_reduction <maximumf>, %131, %cst_46 [1] : vector<16x3xf32> to vector<16xf32>
    %133 = vector.shape_cast %132 : vector<16xf32> to vector<16x1xf32>
    %134 = vector.broadcast %133 : vector<16x1xf32> to vector<16x3xf32>
    %135 = arith.subf %131, %134 : vector<16x3xf32>
    %136 = math.exp %135 : vector<16x3xf32>
    %cst_47 = arith.constant dense<0.000000e+00> : vector<16xf32>
    %137 = vector.multi_reduction <add>, %136, %cst_47 [1] : vector<16x3xf32> to vector<16xf32>
    %138 = vector.shape_cast %137 : vector<16xf32> to vector<16x1xf32>
    %139 = vector.broadcast %138 : vector<16x1xf32> to vector<16x3xf32>
    %140 = arith.divf %136, %139 : vector<16x3xf32>
    %c296 = arith.constant 296 : index
    %c0_48 = arith.constant 0 : index
    %141 = vector.load %arg2[%c296, %c0_48] : memref<400x128xf32, #tpu.memory_space<vmem>>, vector<3x48xf32>
    %cst_49 = arith.constant dense<0.000000e+00> : vector<16x48xf32>
    %142 = tpu.matmul %140, %141, %cst_49 {dimension_numbers = #tpu.dot_dimension_numbers<[1], [0], [0], [1], [0, 0, 1, 1], [], []>} : vector<16x3xf32>, vector<3x48xf32>, vector<16x48xf32> -> vector<16x48xf32>
    %143 = arith.mulf %142, %119 : vector<16x48xf32>
    %c304 = arith.constant 304 : index
    %c0_50 = arith.constant 0 : index
    %144 = vector.load %arg2[%c304, %c0_50] : memref<400x128xf32, #tpu.memory_space<vmem>>, vector<48x16xf32>
    %cst_51 = arith.constant dense<0.000000e+00> : vector<16x16xf32>
    %145 = tpu.matmul %143, %144, %cst_51 {dimension_numbers = #tpu.dot_dimension_numbers<[1], [0], [0], [1], [0, 0, 1, 1], [], []>} : vector<16x48xf32>, vector<48x16xf32>, vector<16x16xf32> -> vector<16x16xf32>
    %146 = vector.shape_cast %145 : vector<16x16xf32> to vector<2x8x16xf32>
    %cst_52 = arith.constant dense<0.000000e+00> : vector<8xf32>
    %147 = vector.multi_reduction <add>, %146, %cst_52 [0, 2] : vector<2x8x16xf32> to vector<8xf32>
    %148 = vector.shape_cast %147 : vector<8xf32> to vector<1x8x1xf32>
    %cst_53 = arith.constant 3.200000e+01 : f32
    %149 = vector.broadcast %cst_53 : f32 to vector<1x8x1xf32>
    %150 = arith.divf %148, %149 : vector<1x8x1xf32>
    %151 = vector.broadcast %150 : vector<1x8x1xf32> to vector<2x8x16xf32>
    %152 = arith.subf %146, %151 : vector<2x8x16xf32>
    %153 = arith.mulf %152, %152 : vector<2x8x16xf32>
    %cst_54 = arith.constant dense<0.000000e+00> : vector<8xf32>
    %154 = vector.multi_reduction <add>, %153, %cst_54 [0, 2] : vector<2x8x16xf32> to vector<8xf32>
    %155 = vector.shape_cast %154 : vector<8xf32> to vector<1x8x1xf32>
    %cst_55 = arith.constant 3.200000e+01 : f32
    %156 = vector.broadcast %cst_55 : f32 to vector<1x8x1xf32>
    %157 = arith.divf %155, %156 : vector<1x8x1xf32>
    %c384 = arith.constant 384 : index
    %c0_56 = arith.constant 0 : index
    %158 = vector.load %arg2[%c384, %c0_56] : memref<400x128xf32, #tpu.memory_space<vmem>>, vector<8x2xf32>
    %159 = vector.broadcast %150 : vector<1x8x1xf32> to vector<2x8x16xf32>
    %160 = arith.subf %146, %159 : vector<2x8x16xf32>
    %cst_57 = arith.constant 9.99999974E-6 : f32
    %161 = vector.broadcast %cst_57 : f32 to vector<1x8x1xf32>
    %162 = arith.addf %157, %161 : vector<1x8x1xf32>
    %163 = math.rsqrt %162 : vector<1x8x1xf32>
    %164 = vector.broadcast %163 : vector<1x8x1xf32> to vector<2x8x16xf32>
    %165 = arith.mulf %160, %164 : vector<2x8x16xf32>
    %166 = vector.extract_strided_slice %158 {offsets = [0, 0], sizes = [8, 1], strides = [1, 1]} : vector<8x2xf32> to vector<8x1xf32>
    %167 = vector.shape_cast %166 : vector<8x1xf32> to vector<1x8x1xf32>
    %168 = vector.broadcast %167 : vector<1x8x1xf32> to vector<2x8x16xf32>
    %169 = arith.mulf %165, %168 : vector<2x8x16xf32>
    %170 = vector.extract_strided_slice %158 {offsets = [0, 1], sizes = [8, 1], strides = [1, 1]} : vector<8x2xf32> to vector<8x1xf32>
    %171 = vector.shape_cast %170 : vector<8x1xf32> to vector<1x8x1xf32>
    %172 = vector.broadcast %171 : vector<1x8x1xf32> to vector<2x8x16xf32>
    %173 = arith.addf %169, %172 : vector<2x8x16xf32>
    %cst_58 = arith.constant 0.000000e+00 : f32
    %174 = vector.broadcast %cst_58 : f32 to vector<2x8x16xf32>
    %175 = arith.maximumf %173, %174 : vector<2x8x16xf32>
    %c352 = arith.constant 352 : index
    %c0_59 = arith.constant 0 : index
    %176 = vector.load %arg2[%c352, %c0_59] : memref<400x128xf32, #tpu.memory_space<vmem>>, vector<16x16xf32>
    %177 = vector.shape_cast %175 : vector<2x8x16xf32> to vector<16x16xf32>
    %c368 = arith.constant 368 : index
    %c0_60 = arith.constant 0 : index
    %178 = vector.load %arg2[%c368, %c0_60] : memref<400x128xf32, #tpu.memory_space<vmem>>, vector<16x16xf32>
    %cst_61 = arith.constant dense<0.000000e+00> : vector<16x16xf32>
    %179 = tpu.matmul %177, %178, %cst_61 {dimension_numbers = #tpu.dot_dimension_numbers<[1], [0], [0], [1], [0, 0, 1, 1], [], []>} : vector<16x16xf32>, vector<16x16xf32>, vector<16x16xf32> -> vector<16x16xf32>
    %cst_62 = arith.constant dense<0.000000e+00> : vector<16x16xf32>
    %180 = tpu.matmul %176, %179, %cst_62 {dimension_numbers = #tpu.dot_dimension_numbers<[1], [0], [0], [1], [0, 0, 1, 1], [], []>} : vector<16x16xf32>, vector<16x16xf32>, vector<16x16xf32> -> vector<16x16xf32>
    %181 = vector.shape_cast %180 : vector<16x16xf32> to vector<2x8x16xf32>
    %182 = vector.shape_cast %140 : vector<16x3xf32> to vector<2x8x3xf32>
    %cst_63 = arith.constant 0.000000e+00 : f32
    %183 = vector.broadcast %cst_63 : f32 to vector<2x8x13xf32>
    %184 = tpu.concatenate %182, %183 in 2 : vector<2x8x3xf32>, vector<2x8x13xf32> -> vector<2x8x16xf32>
    %185 = tpu.concatenate %111, %113, %112, %114, %117, %146, %181, %184 in 2 : vector<2x8x16xf32>, vector<2x8x16xf32>, vector<2x8x16xf32>, vector<2x8x16xf32>, vector<2x8x16xf32>, vector<2x8x16xf32>, vector<2x8x16xf32>, vector<2x8x16xf32> -> vector<2x8x128xf32>
    %c0_64 = arith.constant 0 : index
    %c0_65 = arith.constant 0 : index
    %c0_66 = arith.constant 0 : index
    %186 = vector.load %arg3[%c0_64, %c0_65, %c0_66] : memref<2x8x128xf32, #tpu.memory_space<vmem>>, vector<2x8x128xf32>
    tpu.vector_store %arg3[%c0_64, %c0_65, %c0_66], %185 {strides = array<i32>} : memref<2x8x128xf32, #tpu.memory_space<vmem>>, vector<2x8x128xf32>,
    return
  }
}

</mosaic_0001>

<bundles_post_ra>
// kernel: tpu_custom_call.1
= control target key start
LH: loop header
LB: loop body
LE: loop exit
PB: predicated region body
PF: predicated region fallthrough
CT: control target
= control target key end

     0   :  { %8 = vsyncpa [#allocation3], 0  ;;  %s2072_s0 = inlined_call_operand.hbm [shape: f32[2,8,16], index: 0, kind: input, shape index: {}]   ;;  %s2073_s1 = inlined_call_operand.hbm [shape: f32[2,8,32], index: 1, kind: input, shape index: {}]   ;;  %s2074_s2 = inlined_call_operand.hbm [shape: f32[400,128], index: 2, kind: input, shape index: {}]   ;;  %s2075_s3 = inlined_call_operand.hbm [shape: f32[2,8,128], index: 3, kind: output, shape index: {}]  }
   0x1   :  { %9 = vsyncpa [#allocation6], 0 }
   0x2   :  { %10 = vsyncpa [#allocation4], 0  ;;  %s1852_s12 = smov [#allocation5]   ;;  %s1853_s14 = smov [#allocation2]  }
   0x3   :  { %s28_s13 = sshll.u32 %s1852_s12, 4  ;;  %s16_s15 = sshll.u32 %s1853_s14, 4  ;;  %s29_s13 = int_to_ptr.vmem [resolvable:$true] %s28_s13  ;;  %s17_s15 = int_to_ptr.vmem [resolvable:$true] %s16_s15 }
   0x4   :  { %s1774_s16 = scalar_lea.vmem %s29_s13, 256  ;;  %p1779_p1 = scmp.lt.s32.totalorder %s29_s13, %s29_s13 }
   0x5   :  { %p1775_p0 = scmp.ne.s32.totalorder %s29_s13, %s1774_s16  ;;  %p1780_p2 = scmp.lt.s32.totalorder %s1774_s16, %s1774_s16 }
   0x7   :  { %p1781_p3 = por %p1780_p2, %p1779_p1 }
   0x9   :  { %p1782_p4 = pnand %p1781_p3, %p1775_p0 }
   0xb   :  { %1785 = shalt.err (!%p1782_p4)
}
   0xc   :  { %s1854_s17 = smov 128   ;;  %s1855_s18 = smov 8  }
   0xd   :  { %34 = dma.hbm_to_vmem [thread:$0]  %s2073_s1, 256, %s29_s13, [#allocation6], %s1854_s17, %s1854_s17, %s1855_s18  }
   0xe   :  { %s1794_s21 = scalar_lea.vmem %s17_s15, 256  ;;  %p1799_p6 = scmp.lt.s32.totalorder %s17_s15, %s17_s15 }
   0xf   :  { %p1795_p5 = scmp.ne.s32.totalorder %s17_s15, %s1794_s21  ;;  %p1800_p7 = scmp.lt.s32.totalorder %s1794_s21, %s1794_s21 }
  0x11   :  { %p1801_p8 = por %p1800_p7, %p1799_p6 }
  0x13   :  { %p1802_p9 = pnand %p1801_p8, %p1795_p5 }
  0x15   :  { %1805 = shalt.err (!%p1802_p9)
}
  0x16   :  { %22 = dma.hbm_to_vmem [thread:$0]  %s2072_s0, 256, %s17_s15, [#allocation3], %s1854_s17, %s1854_s17, %s1855_s18  }
  0x17   :  { %s1856_s24 = smov [#allocation7]  }
  0x18   :  { %s40_s25 = sshll.u32 %s1856_s24, 4  ;;  %s41_s25 = int_to_ptr.vmem [resolvable:$true] %s40_s25 }
  0x19   :  { %s1814_s26 = scalar_lea.vmem %s41_s25, 6400  ;;  %p1819_p11 = scmp.lt.s32.totalorder %s41_s25, %s41_s25 }
  0x1a   :  { %p1815_p10 = scmp.ne.s32.totalorder %s41_s25, %s1814_s26  ;;  %p1820_p12 = scmp.lt.s32.totalorder %s1814_s26, %s1814_s26 }
  0x1c   :  { %p1821_p13 = por %p1820_p12, %p1819_p11 }
  0x1e   :  { %p1822_p0 = pnand %p1821_p13, %p1815_p10 }
  0x20   :  { %1825 = shalt.err (!%p1822_p0)
}
  0x21   :  { %46 = dma.hbm_to_vmem [thread:$0]  %s2074_s2, 6400, %s41_s25, [#allocation6], %s1854_s17, %s1854_s17, %s1855_s18  }
  0x22   :  { %1846 = dma.done.wait [#allocation3], 256  }
  0x23   :  { %1847 = vsyncadd [#allocation3], 4294967040 }
  0x24   :  { %1848 = dma.done.wait [#allocation6], 6656  }
  0x25   :  { %1849 = vsyncadd [#allocation6], 4294960640  ;;  %v1857_v0 = vmov 0.0   ;;  %vm1858_vm0 = vmmov 0   ;;  %v107_v1 = vld [vmem:[#allocation7 + $0x40] sm:$0xff]  ;;  %v108_v2 = vld [vmem:[#allocation7 + $0x48] sm:$0xff]  ;;  %v451_v63 = vlaneseq }
  0x26   :  { %1587 = vmatprep.subr.bf16.mxu0 %v1857_v0  ;;  %1591 = vmatprep.mubr.msk.bf16.mxu0 %vm1858_vm0, %v1857_v0  ;;  %v105_v3 = vld [vmem:[#allocation7 + $0x30] sm:$0xff]  ;;  %v111_v4 = vpack.c.bf16 %v108_v2, %v107_v1  ;;  %v106_v5 = vld [vmem:[#allocation7 + $0x38] sm:$0xff]  ;;  %vm117_vm1 = vcmask 261120   ;;  %v166_v10 = vld [vmem:[#allocation7 + $0x60] sm:$0xff]  ;;  %vm215_vm2 = vcmask 31744   ;;  %vm245_vm3 = vcmask 1043456  }
  0x27   :  { %1595 = vmatprep.subr.bf16.mxu1 %v1857_v0  ;;  %1599 = vmatprep.mubr.msk.bf16.mxu1 %vm1858_vm0, %v1857_v0  ;;  %v110_v6 = vpack.c.bf16 %v106_v5, %v105_v3  ;;  %v1911_v7 = vld [vmem:[#allocation5] sm:$0xff]  ;;  %v1913_v8 = vld [vmem:[#allocation5 + $0x8] sm:$0xff]  ;;  %v167_v11 = vld [vmem:[#allocation7 + $0x68] sm:$0xff]  ;;  %vm413_vm4 = vcmask 64512   ;;  %v452_v1 = vand.u32 127, %v451_v63  ;;  %v454_v2 = vshrl.u32 %v451_v63, 7 }
  0x28   :  { %1588 = vmatpush3.bf16.msra.mxu0 %v111_v4  ;;  %v109_v9 = vpack.c.bf16 %v1913_v8, %v1911_v7  ;;  %v164_v12 = vld [vmem:[#allocation7 + $0x50] sm:$0xff]  ;;  %v170_v13 = vpack.c.bf16 %v167_v11, %v166_v10  ;;  %v165_v14 = vld [vmem:[#allocation7 + $0x58] sm:$0xff]  ;;  %v1489_v16 = vld [vmem:[#allocation7 + $0x18a] ss:$0 sm:$0xff]  ;;  %vm59_vm5 = vcmask 130048   ;;  %s1859_s0 = smov 96  }
  0x29   :  { %1589 = vmatprep.subr.bf16.mxu0 %v1857_v0  ;;  %v169_v15 = vpack.c.bf16 %v165_v14, %v164_v12  ;;  %v238_v42 = vld [vmem:[#allocation7 + $0x100] sm:$0xf]  ;;  %v328_v50 = vld [vmem:[#allocation7 + $0x118] sm:$0xff]  ;;  %v327_v51 = vld [vmem:[#allocation7 + $0x110] sm:$0xff]  ;;  %v455_v3 = vsub.s32 %v452_v1, %v454_v2  ;;  %s1860_s2 = smov 112   ;;  %s1861_s28 = smov 16  }
  0x2a   :  { %1596 = vmatpush3.bf16.msra.mxu1 %v170_v13  ;;  %v329_v43 = vld [vmem:[#allocation7 + $0x120] sm:$0xff]  ;;  %v326_v52 = vld [vmem:[#allocation7 + $0x108] sm:$0xff]  ;;  %v442_v53 = vld [vmem:[#allocation7 + $0xd0] sm:$0xff]  ;;  %vm909_vm6 = vcmask 392192   ;;  %vm1010_vm7 = vcmask 23552   ;;  %vm1040_vm8 = vcmask 1042432  }
  0x2b   :  { %1597 = vmatprep.subr.bf16.mxu1 %v1857_v0  ;;  %v443_v54 = vmax.f32 %v442_v53, 0.0  ;;  %v471_v61 = vld [vmem:[#allocation7 + $0xd8] sm:$0xff]  ;;  %s1863_s29 = smov 48   ;;  %s1864_s30 = smov 80   ;;  %vm1455_vm9 = vcmask 523264   ;;  %vm1458_vm10 = vcmask 654336  }
  0x2c   :  { %1590 = vmatpush3.bf16.msra.mxu0 %v110_v6  ;;  %vm1464_vm11 = vcmask 916480   ;;  %vm1461_vm12 = vcmask 785408   ;;  %s1866_s4 = smov [#allocation8]  }
  0x2d   :  { %1603 = vmatprep.subr.msk.mxu0 %vm245_vm3, %v238_v42  ;;  %v444_v55 = vsel %vm413_vm4, %v443_v54, 0.0  ;;  %s1474_s5 = sshll.u32 %s1866_s4, 4  ;;  %s1475_s5 = int_to_ptr.vmem [resolvable:$true] %s1474_s5 }
  0x2e   :  { %1598 = vmatpush3.bf16.msra.mxu1 %v169_v15  ;;  %s1826_s6 = scalar_lea.vmem %s1475_s5, 256  ;;  %p1831_p2 = scmp.lt.s32.totalorder %s1475_s5, %s1475_s5 }
  0x2f   :  { %1592 = vmatmul.mubr.msk.bf16.vlgmr.msra.gmra.mxu0 %vm117_vm1, %v109_v9  ;;  %1608 = vmatprep.subr.mxu1 %v329_v43  ;;  %p1827_p1 = scmp.ne.s32.totalorder %s1475_s5, %s1826_s6  ;;  %p1832_p3 = scmp.lt.s32.totalorder %s1826_s6, %s1826_s6 }
  0x30   :  { %1604 = vmatpush3.msk.msra.mxu0 %vm245_vm3, %v238_v42 }
  0x31   :  { %1619 = vmatprep.subr.mxu0 %v471_v61  ;;  %p1833_p4 = por %p1832_p3, %p1831_p2 }
  0x33   :  { %p1834_p5 = pnand %p1833_p4, %p1827_p1 }
  0xef   :  { %v155_v17 = vpop.f32.mrf.mxu0 }
  0xf0   :  { %v156_v18 = vadd.f32 %v1489_v16, %v155_v17 }
  0xf1   :  { %v1593_v19 = vpop.f32.mrf.mxu0 }
  0xf2   :  { %1732 = vtanh.f32 %v156_v18 }
  0xf3   :  { %v158_v20 = vpop.f32.mrf.mxu0 }
  0xf4   :  { %v159_v21 = vadd.f32 %v1489_v16, %v158_v20 }
  0xf5   :  { %v1594_v22 = vpop.f32.mrf.mxu0 }
  0xf6   :  { %1734 = vtanh.f32 %v159_v21 }
  0xff   :  { %v1733_v23 = vpop.eup %1732 }
 0x103   :  { %v1735_v24 = vpop.eup %1734 }
 0x104   :  { %v168_v25 = vpack.c.bf16 %v1735_v24, %v1733_v23 }
 0x106   :  { %1600 = vmatmul.mubr.msk.bf16.vlgmr.msra.gmra.mxu1 %vm117_vm1, %v168_v25 }
 0x107   :  { %1609 = vmatpush3.msra.mxu1 %v329_v43 }
 0x108   :  { %1610 = vmatprep.subr.mxu1 %v328_v50 }
 0x109   :  { %1611 = vmatpush3.msra.mxu1 %v328_v50 }
 0x10a   :  { %1612 = vmatprep.subr.mxu1 %v327_v51 }
 0x10b   :  { %1613 = vmatpush3.msra.mxu1 %v327_v51 }
 0x10c   :  { %1614 = vmatprep.subr.mxu1 %v326_v52 }
 0x10d   :  { %1615 = vmatpush3.msra.mxu1 %v326_v52 }
 0x1c6   :  { %v208_v26 = vpop.f32.mrf.mxu1 }
 0x1c7   :  { %v216_v27 = vsel %vm215_vm2, %v208_v26, -inf }
 0x1c8   :  { %217 = vmax.xlane.f32.xlu0 %v216_v27  ;;  %v1601_v28 = vpop.f32.mrf.mxu1 }
 0x1c9   :  { %v57_v28 = vld [vmem:[#allocation2] sm:$0xff] }
 0x1ca   :  { %v211_v29 = vpop.f32.mrf.mxu1 }
 0x1cb   :  { %v219_v30 = vsel %vm215_vm2, %v211_v29, -inf }
 0x1cc   :  { %220 = vmax.xlane.f32.xlu0 %v219_v30  ;;  %v1602_v31 = vpop.f32.mrf.mxu1  ;;  %v60_v30 = vsel %vm59_vm5, %v57_v28, 0.0 }
 0x1d0   :  { %445 = vadd.xlane.f32.xlu0 %v444_v55 }
 0x251   :  { %v218_v32 = vpop.xlane.xlu0 %217 }
 0x252   :  { %v222_v33 = vsub.f32 %v208_v26, %v218_v32 }
 0x254   :  { %v224_v34 = vmul.f32 1.442695, %v222_v33 }
 0x255   :  { %v221_v35 = vpop.xlane.xlu0 %220 }
 0x256   :  { %1736 = vpow2.f32 %v224_v34  ;;  %v223_v36 = vsub.f32 %v211_v29, %v221_v35  ;;  %v58_v29 = vld [vmem:[#allocation2 + $0x8] sm:$0xff] }
 0x257   :  { %v61_v31 = vsel %vm59_vm5, %v58_v29, 0.0 }
 0x258   :  { %v226_v37 = vmul.f32 1.442695, %v223_v36  ;;  %v62_v32 = vadd.f32 %v61_v31, %v60_v30 }
 0x259   :  { %v446_v60 = vpop.xlane.xlu0 %445 }
 0x25a   :  { %1738 = vpow2.f32 %v226_v37  ;;  %v447_v62 = vadd.f32 1e-10, %v446_v60  ;;  %v63_v34 = vrot.slane %v62_v32, 4 }
 0x25c   :  { %v64_v36 = vadd.f32 %v63_v34, %v62_v32 }
 0x25e   :  { %v65_v37 = vrot.slane %v64_v36, 2 }
 0x263   :  { %v1737_v38 = vpop.eup %1736 }
 0x264   :  { %v228_v39 = vsel %vm215_vm2, %v1737_v38, 0.0 }
 0x265   :  { %229 = vadd.xlane.f32.xlu1 %v228_v39 }
 0x267   :  { %v1739_v40 = vpop.eup %1738 }
 0x268   :  { %v231_v41 = vsel %vm215_vm2, %v1739_v40, 0.0 }
 0x269   :  { %232 = vadd.xlane.f32.xlu1 %v231_v41 }
 0x2ee   :  { %v230_v44 = vpop.xlane.xlu1 %229 }
 0x2ef   :  { %1740 = vrcp.f32 %v230_v44 }
 0x2f2   :  { %v233_v45 = vpop.xlane.xlu1 %232 }
 0x2f3   :  { %1742 = vrcp.f32 %v233_v45 }
 0x2f4   :  { %1744 = vrsqrt.f32 %v447_v62 }
 0x2fc   :  { %v1741_v46 = vpop.eup %1740 }
 0x2fd   :  { %v236_v47 = vmul.f32 %v1741_v46, %v1737_v38  ;;  %v66_v38 = vadd.f32 %v65_v37, %v64_v36  ;;  %v580_v36 = vld [vmem:[#allocation7 + $0x20] sm:$0xff]  ;;  %v581_v37 = vld [vmem:[#allocation7 + $0x28] sm:$0xff] }
 0x2ff   :  { %1605 = vmatprep.mubr.msk.f32.mxu0 %vm215_vm2, %v236_v47  ;;  %v67_v39 = vrot.slane %v66_v38, 1 }
 0x300   :  { %v1743_v48 = vpop.eup %1742 }
 0x301   :  { %v237_v49 = vmul.f32 %v1743_v48, %v1739_v40  ;;  %v1745_v4 = vpop.eup %1744  ;;  %v68_v40 = vadd.f32 %v67_v39, %v66_v38  ;;  %v584_v38 = vpack.c.bf16 %v581_v37, %v580_v36  ;;  %v956_v36 = vld [vmem:[#allocation7 + $0xa0] sm:$0xff]  ;;  %v957_v37 = vld [vmem:[#allocation7 + $0xa8] sm:$0xff] }
 0x302   :  { %v449_v5 = vmul.f32 %v1745_v4, %v443_v54  ;;  %v456_v6 = vrot.slane %v1745_v4, %v455_v3  ;;  %v567_v4 = vld [vmem:[#allocation7 + $0xe8] sm:$0xff] }
 0x303   :  { %1606 = vmatmul.mubr.msk.f32.vlgmr.msra.gmra.mxu0 %vm215_vm2, %v237_v49  ;;  %v70_v41 = vmul.f32 0.0625, %v68_v40 }
 0x304   :  { %1620 = vmatpush3.msra.mxu0 %v471_v61  ;;  %v1488_v61 = vld [vmem:[#allocation7 + $0x189] ss:$0 sm:$0xff] }
 0x305   :  { %v71_v42 = vsub.f32 %v57_v28, %v70_v41  ;;  %v72_v43 = vsub.f32 %v58_v29, %v70_v41  ;;  %v577_v28 = vld [vmem:[#allocation7 + $0x8] sm:$0xff] }
 0x307   :  { %v73_v44 = vmul.f32 %v71_v42, %v71_v42  ;;  %v74_v45 = vmul.f32 %v72_v43, %v72_v43 }
 0x309   :  { %v75_v46 = vsel %vm59_vm5, %v73_v44, 0.0  ;;  %v76_v47 = vsel %vm59_vm5, %v74_v45, 0.0 }
 0x30a   :  { %v77_v48 = vadd.f32 %v76_v47, %v75_v46 }
 0x30c   :  { %v78_v49 = vrot.slane %v77_v48, 4 }
 0x30e   :  { %v79_v50 = vadd.f32 %v78_v49, %v77_v48 }
 0x310   :  { %v80_v51 = vrot.slane %v79_v50, 2 }
 0x312   :  { %v81_v52 = vadd.f32 %v80_v51, %v79_v50 }
 0x314   :  { %v82_v53 = vrot.slane %v81_v52, 1 }
 0x316   :  { %v83_v54 = vadd.f32 %v82_v53, %v81_v52 }
 0x318   :  { %v84_v55 = vmul.f32 0.0625, %v83_v54 }
 0x3c3   :  { %v1607_v56 = vpop.f32.mrf.mxu0 }
 0x3c4   :  { %v325_v59 = vmul.f32 %v1607_v56, %v1913_v8  ;;  %v85_v56 = vadd.f32 1e-05, %v84_v55  ;;  %v898_v55 = vld [vmem:[#allocation7 + $0x90] sm:$0xff] }
 0x3c5   :  { %v315_v57 = vpop.f32.mrf.mxu0 }
 0x3c6   :  { %v324_v58 = vmul.f32 %v315_v57, %v1911_v7  ;;  %v470_v7 = vmul.f32 %v456_v6, %v449_v5  ;;  %v566_v6 = vld [vmem:[#allocation7 + $0xe0] sm:$0xff] }
 0x3c8   :  { %1616 = vmatprep.mubr.msk.f32.mxu1 %vm117_vm1, %v324_v58  ;;  %1621 = vmatprep.mubr.msk.f32.mxu0 %vm413_vm4, %v470_v7  ;;  %v1487_v58 = vld [vmem:[#allocation7 + $0x188] ss:$0 sm:$0xff] }
 0x3c9   :  { %1617 = vmatmul.mubr.msk.f32.vlgmr.msra.gmra.mxu1 %vm117_vm1, %v325_v59  ;;  %1622 = vmatmul.mubr.msk.f32.vlgmr.msra.gmra.mxu0 %vm413_vm4, %v470_v7 }
 0x489   :  { %v1934_v8 = vpop.f32.mrf.mxu1  ;;  %v1623_v5 = vpop.f32.mrf.mxu0 }
 0x48a   :  { %v412_v9 = vmax.f32 %v1934_v8, 0.0  ;;  %v571_v7 = vmul.f32 %v1623_v5, %v567_v4  ;;  %v578_v8 = vld [vmem:[#allocation7 + $0x10] sm:$0xff]  ;;  %v896_v4 = vld [vmem:[#allocation7 + $0x80] sm:$0xff]  ;;  %v897_v5 = vld [vmem:[#allocation7 + $0x88] sm:$0xff] }
 0x48b   :  { %v1937_v10 = vpop.f32.mrf.mxu1 }
 0x48c   :  { %v421_v11 = vsel %vm413_vm4, %v412_v9, 0.0  ;;  %v411_v12 = vmax.f32 %v1937_v10, 0.0 }
 0x48d   :  { %v422_v13 = vrot.slane %v421_v11, 4 }
 0x48e   :  { %v414_v14 = vsel %vm413_vm4, %v411_v12, 0.0 }
 0x48f   :  { %v423_v15 = vadd.f32 %v422_v13, %v421_v11  ;;  %v415_v16 = vrot.slane %v414_v14, 4  ;;  %v547_v11 = vpop.f32.mrf.mxu0 }
 0x490   :  { %v570_v13 = vmul.f32 %v566_v6, %v547_v11  ;;  %v902_v6 = vpack.c.bf16 %v897_v5, %v896_v4  ;;  %v895_v11 = vld [vmem:[#allocation7 + $0x78] sm:$0xff]  ;;  %v1125_v5 = vld [vmem:[#allocation7 + $0x150] sm:$0xff] }
 0x491   :  { %v424_v17 = vrot.slane %v423_v15, 2  ;;  %v416_v18 = vadd.f32 %v415_v16, %v414_v14  ;;  %v1126_v4 = vld [vmem:[#allocation7 + $0x158] sm:$0xff] }
 0x492   :  { %v574_v14 = vpack.c.bf16 %v571_v7, %v570_v13  ;;  %v894_v7 = vld [vmem:[#allocation7 + $0x70] sm:$0xff] }
 0x493   :  { %v425_v19 = vadd.f32 %v424_v17, %v423_v15  ;;  %v417_v20 = vrot.slane %v416_v18, 2  ;;  %v901_v13 = vpack.c.bf16 %v895_v11, %v894_v7 }
 0x494   :  { %1631 = vmatprep.mubr.msk.bf16.mxu1 %vm117_vm1, %v574_v14 }
 0x495   :  { %v426_v21 = vrot.slane %v425_v19, 1  ;;  %v418_v22 = vadd.f32 %v417_v20, %v416_v18 }
 0x497   :  { %v427_v23 = vadd.f32 %v426_v21, %v425_v19  ;;  %v419_v24 = vrot.slane %v418_v22, 1 }
 0x499   :  { %v429_v25 = vadd.f32 1e-10, %v427_v23  ;;  %v420_v26 = vadd.f32 %v419_v24, %v418_v22  ;;  %v569_v22 = vld [vmem:[#allocation7 + $0xf8] sm:$0xff]  ;;  %v568_v23 = vld [vmem:[#allocation7 + $0xf0] sm:$0xff] }
 0x49b   :  { %1746 = vrsqrt.f32 %v429_v25  ;;  %v428_v27 = vadd.f32 1e-10, %v420_v26 }
 0x49d   :  { %1748 = vrsqrt.f32 %v428_v27 }
 0x49e   :  { %1750 = vrsqrt.f32 %v85_v56  ;;  %v899_v56 = vld [vmem:[#allocation7 + $0x98] sm:$0xff] }
 0x4a8   :  { %v1747_v33 = vpop.eup %1746 }
 0x4a9   :  { %436 = vbcast.lane.b32.xlu0 %v1747_v33, 256 }
 0x4aa   :  { %v1749_v35 = vpop.eup %1748 }
 0x4ab   :  { %433 = vbcast.lane.b32.xlu1 %v1749_v35, 256  ;;  %v1751_v57 = vpop.eup %1750 }
 0x4ac   :  { %v87_v59 = vmul.f32 %v1751_v57, %v71_v42  ;;  %v88_v60 = vmul.f32 %v1751_v57, %v72_v43 }
 0x4ae   :  { %v94_v62 = vmul.f32 %v1487_v58, %v87_v59  ;;  %v95_v63 = vmul.f32 %v1487_v58, %v88_v60  ;;  %v903_v59 = vpack.c.bf16 %v899_v56, %v898_v55 }
 0x4b0   :  { %v101_v1 = vadd.f32 %v1488_v61, %v94_v62  ;;  %v102_v2 = vadd.f32 %v1488_v61, %v95_v63 }
 0x4b2   :  { %v585_v3 = vpack.c.bf16 %v102_v2, %v101_v1 }
 0x4b4   :  { %1627 = vmatprep.subr.bf16.mxu1 %v585_v3 }
 0x4b5   :  { %1628 = vmatpush3.bf16.msra.mxu1 %v585_v3 }
 0x4b6   :  { %1629 = vmatprep.subr.bf16.mxu1 %v585_v3 }
 0x4b9   :  { %1630 = vmatpush3.bf16.msra.mxu1 %v585_v3 }
 0x51b   :  { %v437_v15 = vpop.permute.xlu0 %436 }
 0x51c   :  { %v439_v16 = vmul.f32 %v437_v15, %v412_v9  ;;  %v579_v9 = vld [vmem:[#allocation7 + $0x18] sm:$0xff] }
 0x51d   :  { %v434_v17 = vpop.permute.xlu1 %433  ;;  %v583_v10 = vpack.c.bf16 %v579_v9, %v578_v8 }
 0x51e   :  { %v438_v18 = vmul.f32 %v434_v17, %v411_v12  ;;  %v441_v20 = vmul.f32 %v1747_v33, %v439_v16  ;;  %v576_v12 = vld [vmem:[#allocation7] sm:$0xff] }
 0x51f   :  { %v582_v29 = vpack.c.bf16 %v577_v28, %v576_v12  ;;  %1635 = vmatprep.subr.bf16.mxu0 %v583_v10 }
 0x520   :  { %v440_v19 = vmul.f32 %v1749_v35, %v438_v18  ;;  %1636 = vmatpush3.bf16.msra.mxu0 %v583_v10 }
 0x521   :  { %1641 = vmatprep.subr.bf16.mxu1 %v582_v29 }
 0x522   :  { %1624 = vmatprep.mubr.msk.f32.mxu0 %vm413_vm4, %v440_v19 }
 0x523   :  { %1625 = vmatmul.mubr.msk.f32.gmra.mxu0 %vm413_vm4, %v441_v20 }
 0x5e3   :  { %v1626_v21 = vpop.f32.mrf.mxu0 }
 0x5e4   :  { %v573_v25 = vmul.f32 %v1626_v21, %v569_v22 }
 0x5e5   :  { %v557_v24 = vpop.f32.mrf.mxu0 }
 0x5e6   :  { %v572_v26 = vmul.f32 %v568_v23, %v557_v24 }
 0x5e8   :  { %v575_v27 = vpack.c.bf16 %v573_v25, %v572_v26 }
 0x5ea   :  { %1632 = vmatmul.mubr.msk.bf16.vlgmr.msra.gmra.mxu1 %vm117_vm1, %v575_v27 }
 0x5eb   :  { %1643 = vmatprep.mubr.msk.bf16.mxu1 %vm59_vm5, %v585_v3  ;;  %1642 = vmatpush3.bf16.msra.mxu1 %v582_v29 }
 0x5ec   :  { %1655 = vmatprep.subr.bf16.mxu1 %v584_v38 }
 0x5f2   :  { %1644 = vmatmul.mubr.msk.bf16.vlgmr.msra.gmra.mxu1 %vm59_vm5, %v585_v3 }
 0x5f3   :  { %1656 = vmatpush3.bf16.msra.mxu1 %v584_v38  ;;  %v963_v38 = vpack.c.bf16 %v957_v37, %v956_v36 }
 0x5f4   :  { %1671 = vmatprep.subr.bf16.mxu1 %v1857_v0 }
 0x6aa   :  { %v1633_v30 = vpop.f32.mrf.mxu1 }
 0x6ac   :  { %v626_v31 = vpop.f32.mrf.mxu1 }
 0x6ae   :  { %v1634_v32 = vpop.f32.mrf.mxu1 }
 0x6af   :  { %v642_v33 = vpack.c.bf16 %v1634_v32, %v1633_v30  ;;  %v960_v30 = vld [vmem:[#allocation7 + $0xc0] sm:$0xff]  ;;  %v958_v32 = vld [vmem:[#allocation7 + $0xb0] sm:$0xff] }
 0x6b0   :  { %v629_v34 = vpop.f32.mrf.mxu1 }
 0x6b1   :  { %v641_v35 = vpack.c.bf16 %v629_v34, %v626_v31  ;;  %1647 = vmatprep.subr.bf16.mxu0 %v642_v33  ;;  %v961_v31 = vld [vmem:[#allocation7 + $0xc8] sm:$0xff]  ;;  %v959_v34 = vld [vmem:[#allocation7 + $0xb8] sm:$0xff] }
 0x6b2   :  { %v1645_v49 = vpop.f32.mrf.mxu1 }
 0x6b3   :  { %1637 = vmatprep.mubr.msk.bf16.mxu0 %vm59_vm5, %v641_v35 }
 0x6b4   :  { %1638 = vmatmul.mubr.msk.bf16.vlgmr.msra.gmra.mxu0 %vm59_vm5, %v642_v33  ;;  %v735_v50 = vpop.f32.mrf.mxu1 }
 0x6b5   :  { %1648 = vmatpush3.bf16.msra.mxu0 %v642_v33  ;;  %1651 = vmatprep.mubr.msk.bf16.mxu0 %vm117_vm1, %v574_v14  ;;  %v965_v33 = vpack.c.bf16 %v961_v31, %v960_v30 }
 0x6b6   :  { %1649 = vmatprep.subr.bf16.mxu0 %v641_v35  ;;  %v1646_v51 = vpop.f32.mrf.mxu1 }
 0x6b8   :  { %v738_v52 = vpop.f32.mrf.mxu1 }
 0x6b9   :  { %1650 = vmatpush3.bf16.msra.mxu0 %v641_v35  ;;  %v964_v35 = vpack.c.bf16 %v959_v34, %v958_v32  ;;  %v1225_v34 = vld [vmem:[#allocation7 + $0x180] sm:$0xff] }
 0x6ba   :  { %1661 = vmatprep.subr.bf16.mxu0 %v1857_v0 }
 0x6bc   :  { %1652 = vmatmul.mubr.msk.bf16.vlgmr.msra.gmra.mxu0 %vm117_vm1, %v575_v27 }
 0x6bd   :  { %1667 = vmatprep.mubr.msk.bf16.mxu0 %vm1858_vm0, %v1857_v0  ;;  %1662 = vmatpush3.bf16.msra.mxu0 %v903_v59 }
 0x6be   :  { %1663 = vmatprep.subr.bf16.mxu0 %v1857_v0 }
 0x6c1   :  { %1664 = vmatpush3.bf16.msra.mxu0 %v902_v6  ;;  %v1124_v6 = vld [vmem:[#allocation7 + $0x148] sm:$0xff] }
 0x6c2   :  { %1665 = vmatprep.subr.bf16.mxu0 %v1857_v0 }
 0x6c5   :  { %1666 = vmatpush3.bf16.msra.mxu0 %v901_v13 }
 0x774   :  { %v1639_v39 = vpop.f32.mrf.mxu0 }
 0x775   :  { %v744_v53 = vadd.f32 %v1645_v49, %v1639_v39  ;;  %v1511_v39 = vld [vmem:[#allocation7 + $0x18b] ss:$0 sm:$0xff] }
 0x776   :  { %v683_v40 = vpop.f32.mrf.mxu0 }
 0x777   :  { %v736_v57 = vadd.f32 %v735_v50, %v683_v40 }
 0x778   :  { %v1640_v41 = vpop.f32.mrf.mxu0 }
 0x779   :  { %v747_v61 = vadd.f32 %v1646_v51, %v1640_v41 }
 0x77a   :  { %v686_v42 = vpop.f32.mrf.mxu0 }
 0x77b   :  { %v739_v15 = vadd.f32 %v738_v52, %v686_v42 }
 0x77c   :  { %v1653_v43 = vpop.f32.mrf.mxu0 }
 0x77e   :  { %v784_v44 = vpop.f32.mrf.mxu0 }
 0x780   :  { %v1654_v45 = vpop.f32.mrf.mxu0 }
 0x781   :  { %v800_v48 = vpack.c.bf16 %v1654_v45, %v1653_v43 }
 0x782   :  { %v787_v46 = vpop.f32.mrf.mxu0 }
 0x783   :  { %v799_v47 = vpack.c.bf16 %v787_v46, %v784_v44 }
 0x785   :  { %1657 = vmatprep.mubr.msk.bf16.mxu1 %vm59_vm5, %v799_v47 }
 0x786   :  { %1658 = vmatmul.mubr.msk.bf16.vlgmr.msra.gmra.mxu1 %vm59_vm5, %v800_v48 }
 0x787   :  { %1677 = vmatprep.mubr.msk.bf16.mxu1 %vm1858_vm0, %v1857_v0  ;;  %1672 = vmatpush3.bf16.msra.mxu1 %v965_v33 }
 0x788   :  { %1673 = vmatprep.subr.bf16.mxu1 %v1857_v0 }
 0x78b   :  { %1674 = vmatpush3.bf16.msra.mxu1 %v964_v35 }
 0x78c   :  { %1675 = vmatprep.subr.bf16.mxu1 %v1857_v0 }
 0x78f   :  { %1676 = vmatpush3.bf16.msra.mxu1 %v963_v38 }
 0x790   :  { %1686 = vmatprep.subr.mxu1 %v1126_v4 }
 0x846   :  { %v1659_v54 = vpop.f32.mrf.mxu1 }
 0x847   :  { %v858_v58 = vadd.f32 %v1659_v54, %v744_v53 }
 0x848   :  { %v841_v60 = vpop.f32.mrf.mxu1 }
 0x849   :  { %v1972_v62 = vmax.f32 %v858_v58, 0.0  ;;  %v856_v63 = vadd.f32 %v841_v60, %v736_v57 }
 0x84a   :  { %v1660_v1 = vpop.f32.mrf.mxu1 }
 0x84b   :  { %v859_v2 = vadd.f32 %v1660_v1, %v747_v61  ;;  %866 = vrot.lane.b32.xlu1 %v1972_v62, %s1859_s0  ;;  %v1986_v16 = vmax.f32 %v856_v63, 0.0 }
 0x84c   :  { %v844_v14 = vpop.f32.mrf.mxu1 }
 0x84d   :  { %v1977_v3 = vmax.f32 %v859_v2, 0.0  ;;  %v857_v17 = vadd.f32 %v844_v14, %v739_v15  ;;  %v1033_v2 = vld [vmem:[#allocation7 + $0x128] sm:$0x7] }
 0x84e   :  { %1681 = vmatprep.subr.msk.mxu0 %vm1040_vm8, %v1033_v2 }
 0x84f   :  { %878 = vrot.lane.b32.xlu0 %v1977_v3, %s1860_s2  ;;  %868 = vrot.lane.b32.xlu1 %v1977_v3, %s1859_s0  ;;  %v1989_v20 = vmax.f32 %v857_v17, 0.0 }
 0x853   :  { %876 = vrot.lane.b32.xlu1 %v1972_v62, %s1860_s2 }
 0x8bd   :  { %v867_v18 = vpop.permute.xlu1 %866 }
 0x8be   :  { %v872_v19 = vadd.f32 %v867_v18, %v1986_v16  ;;  %v1123_v18 = vld [vmem:[#allocation7 + $0x140] sm:$0xff] }
 0x8c0   :  { %v1991_v21 = vmul.f32 0.5, %v872_v19  ;;  %v1122_v19 = vld [vmem:[#allocation7 + $0x138] sm:$0xff] }
 0x8c1   :  { %v869_v22 = vpop.permute.xlu1 %868  ;;  %v879_v26 = vpop.permute.xlu0 %878 }
 0x8c2   :  { %v873_v23 = vadd.f32 %v869_v22, %v1989_v20  ;;  %884 = vrot.lane.b32.xlu1 %v1991_v21, %s1861_s28  ;;  %v2002_v8 = vsel %vm59_vm5, %v1989_v20, %v879_v26  ;;  %v1121_v22 = vld [vmem:[#allocation7 + $0x130] sm:$0xff] }
 0x8c4   :  { %v1996_v24 = vmul.f32 0.5, %v873_v23 }
 0x8c5   :  { %v877_v25 = vpop.permute.xlu1 %876 }
 0x8c6   :  { %886 = vrot.lane.b32.xlu0 %v1996_v24, %s1861_s28  ;;  %v2006_v9 = vsel %vm59_vm5, %v1986_v16, %v877_v25 }
 0x934   :  { %v885_v27 = vpop.permute.xlu1 %884 }
 0x935   :  { %v2010_v12 = vsel %vm117_vm1, %v2006_v9, %v885_v27 }
 0x938   :  { %v887_v10 = vpop.permute.xlu0 %886 }
 0x939   :  { %v2014_v28 = vsel %vm117_vm1, %v2002_v8, %v887_v10  ;;  %v1862_v10 = vmov 0  }
 0x93a   :  { %v900_v29 = vpack.c.bf16 %v2014_v28, %v2010_v12  ;;  %1730 = vset.pattern.permute.xlu1 %v1862_v10 }
 0x93c   :  { %1668 = vmatmul.mubr.msk.bf16.vlgmr.msra.gmra.mxu0 %vm909_vm6, %v900_v29 }
 0x93d   :  { %1682 = vmatpush3.msk.msra.mxu0 %vm1040_vm8, %v1033_v2 }
 0x9fc   :  { %v947_v40 = vpop.f32.mrf.mxu0 }
 0x9fd   :  { %v948_v41 = vadd.f32 %v1511_v39, %v947_v40 }
 0x9fe   :  { %v1669_v42 = vpop.f32.mrf.mxu0 }
 0x9ff   :  { %1752 = vtanh.f32 %v948_v41  ;;  %v1247_v41 = vld [vmem:[#allocation7 + $0x170] sm:$0xff] }
 0xa00   :  { %v950_v43 = vpop.f32.mrf.mxu0 }
 0xa01   :  { %v951_v44 = vadd.f32 %v1511_v39, %v950_v43 }
 0xa02   :  { %v1670_v45 = vpop.f32.mrf.mxu0 }
 0xa03   :  { %1754 = vtanh.f32 %v951_v44 }
 0xa0c   :  { %v1753_v46 = vpop.eup %1752 }
 0xa10   :  { %v1755_v47 = vpop.eup %1754 }
 0xa11   :  { %v962_v48 = vpack.c.bf16 %v1755_v47, %v1753_v46 }
 0xa13   :  { %1678 = vmatmul.mubr.msk.bf16.vlgmr.msra.gmra.mxu1 %vm909_vm6, %v962_v48 }
 0xa14   :  { %1687 = vmatpush3.msra.mxu1 %v1126_v4 }
 0xa15   :  { %1688 = vmatprep.subr.mxu1 %v1125_v5 }
 0xa16   :  { %1689 = vmatpush3.msra.mxu1 %v1125_v5 }
 0xa17   :  { %1690 = vmatprep.subr.mxu1 %v1124_v6 }
 0xa18   :  { %1691 = vmatpush3.msra.mxu1 %v1124_v6 }
 0xa19   :  { %1692 = vmatprep.subr.mxu1 %v1123_v18 }
 0xa1a   :  { %1693 = vmatpush3.msra.mxu1 %v1123_v18 }
 0xa1b   :  { %1694 = vmatprep.subr.mxu1 %v1122_v19 }
 0xa1c   :  { %1695 = vmatpush3.msra.mxu1 %v1122_v19 }
 0xa1d   :  { %1696 = vmatprep.subr.mxu1 %v1121_v22 }
 0xa1e   :  { %1697 = vmatpush3.msra.mxu1 %v1121_v22 }
 0xad3   :  { %v1003_v49 = vpop.f32.mrf.mxu1 }
 0xad4   :  { %v1011_v50 = vsel %vm1010_vm7, %v1003_v49, -inf }
 0xad5   :  { %1012 = vmax.xlane.f32.xlu1 %v1011_v50  ;;  %v1679_v0 = vpop.f32.mrf.mxu1 }
 0xad7   :  { %v1006_v51 = vpop.f32.mrf.mxu1 }
 0xad8   :  { %v1014_v52 = vsel %vm1010_vm7, %v1006_v51, -inf }
 0xad9   :  { %1015 = vmax.xlane.f32.xlu0 %v1014_v52  ;;  %v1680_v53 = vpop.f32.mrf.mxu1 }
 0xb5e   :  { %v1013_v54 = vpop.xlane.xlu1 %1012 }
 0xb5f   :  { %v1017_v55 = vsub.f32 %v1003_v49, %v1013_v54 }
 0xb61   :  { %v1019_v56 = vmul.f32 1.442695, %v1017_v55  ;;  %v1245_v55 = vld [vmem:[#allocation7 + $0x160] sm:$0xff] }
 0xb62   :  { %v1016_v57 = vpop.xlane.xlu0 %1015 }
 0xb63   :  { %1756 = vpow2.f32 %v1019_v56  ;;  %v1018_v58 = vsub.f32 %v1006_v51, %v1016_v57 }
 0xb65   :  { %v1021_v59 = vmul.f32 1.442695, %v1018_v58  ;;  %v1246_v58 = vld [vmem:[#allocation7 + $0x168] sm:$0xff] }
 0xb67   :  { %1758 = vpow2.f32 %v1021_v59 }
 0xb70   :  { %v1757_v60 = vpop.eup %1756 }
 0xb71   :  { %v1023_v61 = vsel %vm1010_vm7, %v1757_v60, 0.0 }
 0xb72   :  { %1024 = vadd.xlane.f32.xlu0 %v1023_v61 }
 0xb74   :  { %v1759_v63 = vpop.eup %1758 }
 0xb75   :  { %v1026_v1 = vsel %vm1010_vm7, %v1759_v63, 0.0 }
 0xb76   :  { %1027 = vadd.xlane.f32.xlu0 %v1026_v1 }
 0xbfb   :  { %v1025_v7 = vpop.xlane.xlu0 %1024 }
 0xbfc   :  { %1760 = vrcp.f32 %v1025_v7 }
 0xbff   :  { %v1028_v11 = vpop.xlane.xlu0 %1027 }
 0xc00   :  { %1762 = vrcp.f32 %v1028_v11 }
 0xc09   :  { %v1761_v13 = vpop.eup %1760 }
 0xc0a   :  { %v1030_v14 = vmul.f32 %v1761_v13, %v1757_v60 }
 0xc0c   :  { %1683 = vmatprep.mubr.msk.f32.mxu0 %vm1010_vm7, %v1030_v14 }
 0xc0d   :  { %v1763_v15 = vpop.eup %1762 }
 0xc0e   :  { %v2027_v17 = vmul.f32 %v1763_v15, %v1759_v63 }
 0xc10   :  { %1684 = vmatmul.mubr.msk.f32.vlgmr.msra.gmra.mxu0 %vm1010_vm7, %v2027_v17  ;;  %v1412_v61 = vsel %vm1010_vm7, %v2027_v17, 0.0 }
 0xcd0   :  { %v1685_v23 = vpop.f32.mrf.mxu0 }
 0xcd1   :  { %v1120_v27 = vmul.f32 %v1685_v23, %v2014_v28 }
 0xcd2   :  { %v1110_v25 = vpop.f32.mrf.mxu0 }
 0xcd3   :  { %v1119_v26 = vmul.f32 %v1110_v25, %v2010_v12  ;;  %v1865_v12 = vmov 1  }
 0xcd4   :  { %1731 = vset.pattern.permute.xlu0 %v1865_v12 }
 0xcd5   :  { %1698 = vmatprep.mubr.msk.f32.mxu1 %vm909_vm6, %v1119_v26 }
 0xcd6   :  { %1699 = vmatmul.mubr.msk.f32.vlgmr.msra.gmra.mxu1 %vm909_vm6, %v1120_v27 }
 0xd96   :  { %v1700_v29 = vpop.f32.mrf.mxu1 }
 0xd97   :  { %v1209_v32 = vsel %vm59_vm5, %v1700_v29, 0.0 }
 0xd98   :  { %v1199_v30 = vpop.f32.mrf.mxu1 }
 0xd99   :  { %v1208_v31 = vsel %vm59_vm5, %v1199_v30, 0.0 }
 0xd9a   :  { %v1210_v33 = vadd.f32 %v1209_v32, %v1208_v31 }
 0xd9c   :  { %1211 = vadd.xlane.f32.xlu1 %v1210_v33 }
 0xdad   :  { %1232 = vperm.xlu1 %1730, %v1225_v34  }
 0xdb1   :  { %1415 = vrot.lane.b32.xlu1 %v1986_v16, %s1861_s28 }
 0xdb5   :  { %1417 = vrot.lane.b32.xlu1 %v1989_v20, %s1861_s28 }
 0xdb9   :  { %1421 = vrot.lane.b32.xlu1 %v1991_v21, %s1863_s29  ;;  %v1411_v21 = vsel %vm1010_vm7, %v1030_v14, 0.0 }
 0xdbd   :  { %1423 = vrot.lane.b32.xlu1 %v1996_v24, %s1863_s29  ;;  %v1248_v24 = vld [vmem:[#allocation7 + $0x178] sm:$0xff] }
 0xdbe   :  { %1701 = vmatprep.subr.mxu0 %v1248_v24 }
 0xdbf   :  { %1702 = vmatpush3.msra.mxu0 %v1248_v24 }
 0xdc0   :  { %1703 = vmatprep.subr.mxu0 %v1247_v41 }
 0xdc1   :  { %1429 = vrot.lane.b32.xlu1 %v1199_v30, %s1864_s30  ;;  %1704 = vmatpush3.msra.mxu0 %v1247_v41 }
 0xdc5   :  { %1431 = vrot.lane.b32.xlu1 %v1700_v29, %s1864_s30 }
 0xe25   :  { %v1212_v28 = vpop.xlane.xlu1 %1211 }
 0xe26   :  { %v1214_v35 = vmul.f32 0.03125, %v1212_v28 }
 0xe28   :  { %v1215_v36 = vsub.f32 %v1199_v30, %v1214_v35  ;;  %v1216_v37 = vsub.f32 %v1700_v29, %v1214_v35 }
 0xe29   :  { %v1233_v48 = vpop.permute.xlu1 %1232 }
 0xe2a   :  { %v1217_v38 = vmul.f32 %v1215_v36, %v1215_v36  ;;  %v1218_v39 = vmul.f32 %v1216_v37, %v1216_v37 }
 0xe2c   :  { %v1219_v16 = vsel %vm59_vm5, %v1217_v38, 0.0  ;;  %v1220_v20 = vsel %vm59_vm5, %v1218_v39, 0.0 }
 0xe2d   :  { %v1221_v40 = vadd.f32 %v1220_v20, %v1219_v16  ;;  %v1416_v63 = vpop.permute.xlu1 %1415 }
 0xe2e   :  { %v1451_v7 = vsel %vm117_vm1, %v2006_v9, %v1416_v63 }
 0xe2f   :  { %1222 = vadd.xlane.f32.xlu0 %v1221_v40  ;;  %v1453_v14 = vsel %vm909_vm6, %v1451_v7, %v1972_v62 }
 0xe31   :  { %v1418_v1 = vpop.permute.xlu1 %1417 }
 0xe32   :  { %v1452_v13 = vsel %vm117_vm1, %v2002_v8, %v1418_v1 }
 0xe33   :  { %v1454_v19 = vsel %vm909_vm6, %v1452_v13, %v1977_v3 }
 0xe35   :  { %v1422_v2 = vpop.permute.xlu1 %1421 }
 0xe36   :  { %v1456_v15 = vsel %vm1455_vm9, %v1453_v14, %v1422_v2 }
 0xe39   :  { %v1424_v4 = vpop.permute.xlu1 %1423 }
 0xe3a   :  { %v1457_v9 = vsel %vm1455_vm9, %v1454_v19, %v1424_v4 }
 0xe3d   :  { %v1430_v5 = vpop.permute.xlu1 %1429 }
 0xe3e   :  { %v1459_v17 = vsel %vm1458_vm10, %v1456_v15, %v1430_v5 }
 0xe41   :  { %v1432_v6 = vpop.permute.xlu1 %1431 }
 0xe42   :  { %v1460_v26 = vsel %vm1458_vm10, %v1457_v9, %v1432_v6 }
 0xe45   :  { %1238 = vperm.xlu0 %1731, %v1225_v34  }
 0xe49   :  { %1445 = vrot.lane.b32.xlu0 %v1411_v21, %s1860_s2 }
 0xeb8   :  { %v1223_v42 = vpop.xlane.xlu0 %1222 }
 0xeb9   :  { %v1224_v43 = vmul.f32 0.03125, %v1223_v42 }
 0xebb   :  { %v1226_v44 = vadd.f32 1e-05, %v1224_v43 }
 0xebd   :  { %1764 = vrsqrt.f32 %v1226_v44 }
 0xec0   :  { %v1239_v0 = vpop.permute.xlu0 %1238 }
 0xec4   :  { %v1446_v22 = vpop.permute.xlu0 %1445 }
 0xeca   :  { %v1765_v45 = vpop.eup %1764 }
 0xecb   :  { %v1228_v46 = vmul.f32 %v1765_v45, %v1215_v36  ;;  %v1229_v47 = vmul.f32 %v1765_v45, %v1216_v37 }
 0xecd   :  { %v1235_v49 = vmul.f32 %v1233_v48, %v1228_v46  ;;  %v1236_v50 = vmul.f32 %v1233_v48, %v1229_v47 }
 0xecf   :  { %v1241_v51 = vadd.f32 %v1239_v0, %v1235_v49  ;;  %v1242_v52 = vadd.f32 %v1239_v0, %v1236_v50 }
 0xed1   :  { %v1243_v53 = vmax.f32 %v1241_v51, 0.0  ;;  %v1244_v54 = vmax.f32 %v1242_v52, 0.0 }
 0xed3   :  { %1705 = vmatprep.mubr.msk.f32.mxu0 %vm59_vm5, %v1243_v53 }
 0xed4   :  { %1706 = vmatmul.mubr.msk.f32.vlgmr.msra.gmra.mxu0 %vm59_vm5, %v1244_v54 }
 0xed5   :  { %1712 = vmatprep.mubr.msk.f32.mxu0 %vm59_vm5, %v1245_v55 }
 0xf94   :  { %v1707_v56 = vpop.f32.mrf.mxu0 }
 0xf95   :  { %1708 = vmatprep.subr.mxu0 %v1707_v56 }
 0xf96   :  { %v1321_v57 = vpop.f32.mrf.mxu0  ;;  %1709 = vmatpush3.msra.mxu0 %v1707_v56 }
 0xf97   :  { %1710 = vmatprep.subr.mxu0 %v1321_v57 }
 0xf98   :  { %1711 = vmatpush3.msra.mxu0 %v1321_v57 }
 0xf99   :  { %1713 = vmatmul.mubr.msk.f32.vlgmr.msra.gmra.mxu0 %vm59_vm5, %v1246_v58 }
0x1059   :  { %v1714_v59 = vpop.f32.mrf.mxu0 }
0x105a   :  { %1439 = vrot.lane.b32.xlu1 %v1714_v59, %s1859_s0 }
0x105b   :  { %v1402_v60 = vpop.f32.mrf.mxu0 }
0x105e   :  { %1437 = vrot.lane.b32.xlu1 %v1402_v60, %s1859_s0 }
0x1062   :  { %1447 = vrot.lane.b32.xlu1 %v1412_v61, %s1860_s2 }
0x10cc   :  { %v1440_v11 = vpop.permute.xlu1 %1439 }
0x10cd   :  { %v1463_v8 = vsel %vm1461_vm12, %v1460_v26, %v1440_v11 }
0x10d0   :  { %v1438_v18 = vpop.permute.xlu1 %1437 }
0x10d1   :  { %v1462_v23 = vsel %vm1461_vm12, %v1459_v17, %v1438_v18 }
0x10d2   :  { %v1465_v25 = vsel %vm1464_vm11, %v1462_v23, %v1446_v22 }
0x10d3   :  { %1467 = vst [vmem:[#allocation8] sm:$0xff] %v1465_v25 }
0x10d4   :  { %v1448_v27 = vpop.permute.xlu1 %1447 }
0x10d5   :  { %v1466_v62 = vsel %vm1464_vm11, %v1463_v8, %v1448_v27 }
0x10d6   :  { %1468 = vst [vmem:[#allocation8 + $0x8] sm:$0xff] %v1466_v62 }
0x10d7   :  { %1837 = shalt.err (!%p1834_p5)
}
0x10d8   :  { %1480 = dma.vmem_to_hbm [thread:$0]  %s1475_s5, 256, %s2075_s3, [#allocation4], %s1854_s17, %s1854_s17, %s1855_s18  }
0x10d9   :  { %1850 = dma.done.wait [#allocation4], 256  }
0x10da   :  { %1851 = vsyncadd [#allocation4], 4294967040 }
0x10db   :  { %1484 = vsyncpa [#allocation3], 1 }
0x10dc   :  { %1485 = vsyncpa [#allocation6], 1 }
0x10dd   :  { %1486 = vsyncpa [#allocation4], 1 }

</bundles_post_ra>
